<compile_context>
chip_gen: v7x
topology: tpu7x:2x2x1
jax: 0.10.0
libtpu: 0.0.40
codegen_flags: <defaults>
</compile_context>

<pallas_src>
import jax
import jax.numpy as jnp
from jax import lax
from jax.experimental import pallas as pl
from jax.experimental.pallas import tpu as pltpu


def _round_up(x, k):
    return ((x + k - 1) // k) * k


def _largest_tile(n, cap):
    """Largest multiple of 128 that divides n (n % 128 == 0) and is <= cap."""
    t = max(128, (min(cap, n) // 128) * 128)
    while t > 128:
        if n % t == 0:
            return t
        t -= 128
    return 128


# ----------------------------------------------------------------------------
# Kernel A: softmax over classes + masked |one_hot - prob| error (+ negated
# copy used as ascending sort keys).
# ----------------------------------------------------------------------------
def _softmax_err_kernel(logits_ref, label_ref, errs_ref, neg_ref):
    lg = logits_ref[0]                       # (C, T) f32
    lb = label_ref[0]                        # (1, T) i32; ignored/padded == -1
    c, t = lg.shape

    mx = jnp.max(lg, axis=0, keepdims=True)
    e = jnp.exp(lg - mx)
    # Exact divide kept on purpose: approx reciprocal breaks the 1e-5 errs
    # tolerance; Kernel A is memory-bound so the divide hides under the DMA.
    probs = e / jnp.sum(e, axis=0, keepdims=True)

    cls = lax.broadcasted_iota(jnp.int32, (c, t), 0)
    valid = (lb >= 0).astype(jnp.float32)    # (1, T) broadcasts over C
    oh = jnp.where(cls == lb, 1.0, 0.0)
    err = jnp.abs(oh - probs) * valid
    errs_ref[...] = err
    neg_ref[...] = -err


def _compute_errs(x3, lb3, tile_hw):
    nb, c, hw_eff = x3.shape
    tpb = hw_eff // tile_hw
    mtot = nb * hw_eff
    return pl.pallas_call(
        _softmax_err_kernel,
        out_shape=(jax.ShapeDtypeStruct((c, mtot), jnp.float32),
                   jax.ShapeDtypeStruct((c, mtot), jnp.float32)),
        grid=(nb, tpb),
        in_specs=[pl.BlockSpec((1, c, tile_hw), lambda b, i: (b, 0, i)),
                  pl.BlockSpec((1, 1, tile_hw), lambda b, i: (b, 0, i))],
        out_specs=[pl.BlockSpec((c, tile_hw), lambda b, i: (0, b * tpb + i)),
                   pl.BlockSpec((c, tile_hw), lambda b, i: (0, b * tpb + i))],
        compiler_params=pltpu.CompilerParams(
            dimension_semantics=("parallel", "parallel"),
            vmem_limit_bytes=32 * 1024 * 1024),
    )(x3, lb3)


# ----------------------------------------------------------------------------
# Kernel B: Lovasz gradient + per-class loss, two-half split + chunked cumsum.
# ----------------------------------------------------------------------------
def _lovasz_loss_kernel(neg_ref, lb_ref, npos_ref, start_ref, tri_ref,
                        loss_ref, cum_ref, lacc_ref):
    h = pl.program_id(0)
    i = pl.program_id(1)
    nsteps = pl.num_programs(1)

    c, tb = lb_ref.shape
    chunk = tri_ref.shape[0]
    n_chunks = tb // chunk

    @pl.when(i == 0)
    def _init():
        cum_ref[...] = start_ref[0]                      # per-half starting cumsum
        lacc_ref[...] = jnp.zeros((c, 1), jnp.float32)

    n_pos = npos_ref[...]                                # (C, 1)
    tri = tri_ref[...]                                   # (chunk, chunk) bf16, resident

    cls = lax.broadcasted_iota(jnp.int32, (c, chunk), 0)
    lane = lax.broadcasted_iota(jnp.int32, (c, chunk), 1)
    col_base = (h * nsteps + i) * tb                     # global column of this tile

    def chunk_body(k, carry):
        cum_in, lacc = carry
        off = k * chunk
        lb = lb_ref[:, pl.ds(pl.multiple_of(off, chunk), chunk)]     # (C, chunk)
        es = -neg_ref[:, pl.ds(pl.multiple_of(off, chunk), chunk)]   # (C, chunk)
        oh = jnp.where(lb == cls, 1.0, 0.0)

        # Local inclusive cumsum via small resident triangular matmul
        # (bf16 0/1 operands, f32 accumulation — bit exact).
        local = jnp.dot(oh.astype(jnp.bfloat16), tri,
                        preferred_element_type=jnp.float32)
        cum = cum_in + local                              # global inclusive cumsum

        col = col_base + off + lane                       # global column index j
        colf = col.astype(jnp.float32)
        is0 = col == 0

        inter = n_pos - cum
        union = n_pos + (colf + 1.0) - cum                # cumsum(1-oh) = (j+1)-cum
        jacc = 1.0 - inter / union

        cum_prev = cum - oh                               # exclusive cumsum
        inter_p = n_pos - cum_prev
        union_p = n_pos + colf - cum_prev                 # `union` at column j-1
        union_p = jnp.where(is0, 1.0, union_p)            # guard 0/0 dead branch
        jacc_prev = jnp.where(is0, 0.0, 1.0 - inter_p / union_p)

        grad = jacc - jacc_prev
        lacc = lacc + jnp.sum(es * grad, axis=1, keepdims=True)
        return (cum[:, chunk - 1:chunk], lacc)            # carry last column

    cum_fin, lacc_d = lax.fori_loop(
        0, n_chunks, chunk_body,
        (cum_ref[...], jnp.zeros((c, 1), jnp.float32)))
    cum_ref[...] = cum_fin
    lacc_ref[...] += lacc_d

    @pl.when(i == nsteps - 1)
    def _fin():
        loss_ref[...] = jnp.sum(lacc_ref[...], axis=1)[None, None, :]


def _compute_losses(neg_sorted, lb_sorted, n_pos, start, tri, tile_b, split):
    c, mp = neg_sorted.shape
    mh = mp // split
    nhalf = mh // tile_b
    out = pl.pallas_call(
        _lovasz_loss_kernel,
        out_shape=jax.ShapeDtypeStruct((split, 1, c), jnp.float32),
        grid=(split, nhalf),
        in_specs=[
            pl.BlockSpec((c, tile_b), lambda h, i: (0, h * nhalf + i)),
            pl.BlockSpec((c, tile_b), lambda h, i: (0, h * nhalf + i)),
            pl.BlockSpec((c, 1), lambda h, i: (0, 0)),
            pl.BlockSpec((1, c, 1), lambda h, i: (h, 0, 0)),
            pl.BlockSpec(tri.shape, lambda h, i: (0, 0)),
        ],
        out_specs=pl.BlockSpec((1, 1, c), lambda h, i: (h, 0, 0)),
        scratch_shapes=[pltpu.VMEM((c, 1), jnp.float32),
                        pltpu.VMEM((c, 1), jnp.float32)],
        compiler_params=pltpu.CompilerParams(
            dimension_semantics=("parallel", "arbitrary"),
            vmem_limit_bytes=32 * 1024 * 1024),
    )(neg_sorted, lb_sorted, n_pos, start, tri)
    return jnp.sum(out, axis=(0, 1))                      # (C,)


# ----------------------------------------------------------------------------
# Wrapper mirroring LovaszSoftmax.forward (module has no learned parameters).
# ----------------------------------------------------------------------------
def lovasz_softmax(logits, label, reduction="mean", ignore_index=-100):
    n, c, h, w = logits.shape
    hw = h * w
    m = n * hw
    label1d = label.reshape(m).astype(jnp.int32)
    # Remap ignored labels to -1 so kernels only ever test `lb >= 0`.
    label1d = jnp.where(label1d == ignore_index, -1, label1d)

    # VMEM-aware tile caps (double-buffered blocks well under the 16/32 MiB
    # scoped defaults across v5e/v6e/v7x).
    cap_a = max(128, min(32768, ((12 * 2**20) // (8 * (3 * c + 1))) // 128 * 128))
    cap_b = max(128, min(8192, ((10 * 2**20) // (16 * c)) // 128 * 128))

    if hw % 128 == 0:
        # Direct path: no NCHW->(C,M) transpose; Kernel A reads (1,C,tile) slabs
        # of logits.reshape(N,C,HW) and writes straight into the (C, M) layout.
        x3 = logits.reshape(n, c, hw).astype(jnp.float32)
        lb3 = label1d.reshape(n, 1, hw)
        lb_cols = label1d
        tile_hw = _largest_tile(hw, cap_a)
    else:
        # TODO(synk): H*W not lane-aligned — fall back to an XLA transpose+pad
        # (rare for segmentation resolutions).
        x2 = jnp.transpose(logits, (1, 0, 2, 3)).reshape(c, m).astype(jnp.float32)
        tile_hw = min(4096, _round_up(m, 128))
        mp_a = _round_up(m, 2 * tile_hw)
        x3 = jnp.pad(x2, ((0, 0), (0, mp_a - m)))[None]
        lb_cols = jnp.pad(label1d, (0, mp_a - m), constant_values=-1)
        lb3 = lb_cols.reshape(1, 1, mp_a)

    errs_full, neg_full = _compute_errs(x3, lb3, tile_hw)            # (C, Mtot) x2
    mtot = errs_full.shape[1]

    # Descending sort realized as an ascending key-value co-sort on -errs:
    # one lax.sort replaces argsort + two take_along_axis gathers.
    # TODO(synk): the sort itself has no Pallas/Mosaic TPU lowering; stays XLA.
    lb_b = jnp.broadcast_to(lb_cols[None, :], (c, mtot))
    neg_sorted, lb_sorted = lax.sort((neg_full, lb_b), dimension=1,
                                     num_keys=1, is_stable=False)

    # Per-class positive counts (ignored/padded labels are -1, never counted).
    cls_col = jnp.arange(c, dtype=jnp.int32)[:, None]
    n_pos = jnp.sum((label1d[None, :] == cls_col).astype(jnp.float32),
                    axis=1, keepdims=True)                           # (C, 1)

    # Two-half split of the sorted-pixel reduction (parallel axis uses both
    # TensorCores on v7x; neutral elsewhere).
    split = 2 if mtot % 256 == 0 else 1
    mh = mtot // split
    tile_b = _largest_tile(mh, cap_b)
    chunk = 256 if tile_b % 256 == 0 else 128

    rk = jnp.arange(chunk, dtype=jnp.int32)
    tri = (rk[:, None] <= rk[None, :]).astype(jnp.bfloat16)          # resident in VMEM

    if split == 2:
        start1 = jnp.sum((lb_sorted[:, :mh] == cls_col).astype(jnp.float32),
                         axis=1, keepdims=True)                      # (C, 1)
        start = jnp.stack([jnp.zeros_like(start1), start1], axis=0)  # (2, C, 1)
    else:
        start = jnp.zeros((1, c, 1), jnp.float32)

    losses = _compute_losses(neg_sorted, lb_sorted, n_pos, start, tri,
                             tile_b, split)                          # (C,)

    if reduction == "sum":
        loss = jnp.sum(losses)
    elif reduction == "mean":
        loss = jnp.mean(losses)
    else:
        loss = losses

    # TODO(synk): torch.nonzero() dynamic filtering of ignore_index has no
    # static-shape equivalent; the returned `errs` keeps all pixel columns when
    # ignored labels exist (the loss is identical — those columns are zero).
    errs = errs_full[:, :m]
    return loss, errs


# ----------------------------------------------------------------------------
# Pure-JAX reference mirroring the PyTorch forward (no ignored labels).
# ----------------------------------------------------------------------------
def _reference(logits, label):
    n, c, h, w = logits.shape
    lg = jnp.transpose(logits, (1, 0, 2, 3)).reshape(c, -1).astype(jnp.float32)
    lb = label.reshape(-1)
    probs = jax.nn.softmax(lg, axis=0)
    oh = (jnp.arange(c)[:, None] == lb[None, :]).astype(jnp.float32)
    errs = jnp.abs(oh - probs)
    order = jnp.argsort(errs, axis=1, descending=True)
    errs_sort = jnp.take_along_axis(errs, order, axis=1)
    oh_sort = jnp.take_along_axis(oh, order, axis=1)
    n_pos = oh_sort.sum(axis=1, keepdims=True)
    inter = n_pos - jnp.cumsum(oh_sort, axis=1)
    union = n_pos + jnp.cumsum(1.0 - oh_sort, axis=1)
    jacc = 1.0 - inter / union
    jacc = jacc.at[:, 1:].set(jacc[:, 1:] - jacc[:, :-1])
    losses = jnp.sum(errs_sort * jacc, axis=1)
    return jnp.mean(losses), errs


if __name__ == "__main__":
    key = jax.random.PRNGKey(0)
    k1, k2 = jax.random.split(key)
    N, C, H, W = 2, 4, 16, 16
    logits = jax.random.normal(k1, (N, C, H, W), dtype=jnp.float32)
    label = jax.random.randint(k2, (N, H, W), 0, C, dtype=jnp.int32)

    loss, errs = lovasz_softmax(logits, label)
    jax.block_until_ready((loss, errs))

    ref_loss, ref_errs = _reference(logits, label)
    assert errs.shape == (C, N * H * W)
    assert jnp.allclose(errs, ref_errs, atol=1e-5, rtol=1e-4), "errs mismatch"
    assert jnp.allclose(loss, ref_loss, atol=1e-5, rtol=1e-4), "loss mismatch"

    print("KERNEL_OK")
</pallas_src>

<mosaic_0001>
module attributes {stable_mosaic.version = 11 : i64} {
  func.func @_softmax_err_kernel(%arg0: i32, %arg1: i32, %arg2: memref<1x4x256xf32, #tpu.memory_space<vmem>>, %arg3: memref<1x1x256xi32, #tpu.memory_space<vmem>>, %arg4: memref<4x256xf32, #tpu.memory_space<vmem>>, %arg5: memref<4x256xf32, #tpu.memory_space<vmem>>) attributes {dimension_semantics = [#tpu.dimension_semantics<parallel>, #tpu.dimension_semantics<parallel>], iteration_bounds = array<i64: 2, 1>, scalar_prefetch = 0 : i64, scratch_operands = 0 : i64, tpu.core_type = #tpu.core_type<tc>, window_params = [{transform_indices = @transform_0, window_bounds = array<i64: 1, 4, 256>}, {transform_indices = @transform_1, window_bounds = array<i64: 1, 1, 256>}, {transform_indices = @transform_2, window_bounds = array<i64: 4, 256>}, {transform_indices = @transform_3, window_bounds = array<i64: 4, 256>}]} {
    %c0 = arith.constant 0 : index
    %c0_0 = arith.constant 0 : index
    %c0_1 = arith.constant 0 : index
    %0 = vector.load %arg2[%c0, %c0_0, %c0_1] : memref<1x4x256xf32, #tpu.memory_space<vmem>>, vector<1x4x256xf32>
    %1 = vector.shape_cast %0 : vector<1x4x256xf32> to vector<4x256xf32>
    %c0_2 = arith.constant 0 : index
    %c0_3 = arith.constant 0 : index
    %c0_4 = arith.constant 0 : index
    %2 = vector.load %arg3[%c0_2, %c0_3, %c0_4] : memref<1x1x256xi32, #tpu.memory_space<vmem>>, vector<1x1x256xi32>
    %3 = vector.shape_cast %2 : vector<1x1x256xi32> to vector<1x256xi32>
    %cst = arith.constant dense<0xFF800000> : vector<256xf32>
    %4 = vector.multi_reduction <maximumf>, %1, %cst [0] : vector<4x256xf32> to vector<256xf32>
    %5 = vector.shape_cast %4 : vector<256xf32> to vector<1x256xf32>
    %6 = vector.broadcast %5 : vector<1x256xf32> to vector<4x256xf32>
    %7 = arith.subf %1, %6 : vector<4x256xf32>
    %8 = math.exp %7 : vector<4x256xf32>
    %cst_5 = arith.constant dense<0.000000e+00> : vector<256xf32>
    %9 = vector.multi_reduction <add>, %8, %cst_5 [0] : vector<4x256xf32> to vector<256xf32>
    %10 = vector.shape_cast %9 : vector<256xf32> to vector<1x256xf32>
    %11 = vector.broadcast %10 : vector<1x256xf32> to vector<4x256xf32>
    %12 = arith.divf %8, %11 : vector<4x256xf32>
    %13 = tpu.iota {dimensions = array<i32: 0>} : vector<4x256xi32>
    %c0_i32 = arith.constant 0 : i32
    %14 = vector.broadcast %c0_i32 : i32 to vector<1x256xi32>
    %15 = arith.cmpi sge, %3, %14 : vector<1x256xi32>
    %16 = arith.extui %15 : vector<1x256xi1> to vector<1x256xi32>
    %17 = arith.sitofp %16 : vector<1x256xi32> to vector<1x256xf32>
    %18 = vector.broadcast %3 : vector<1x256xi32> to vector<4x256xi32>
    %19 = arith.cmpi eq, %13, %18 : vector<4x256xi32>
    %cst_6 = arith.constant 1.000000e+00 : f32
    %cst_7 = arith.constant 0.000000e+00 : f32
    %20 = vector.broadcast %cst_6 : f32 to vector<4x256xf32>
    %21 = vector.broadcast %cst_7 : f32 to vector<4x256xf32>
    %22 = arith.select %19, %20, %21 : vector<4x256xi1>, vector<4x256xf32>
    %23 = arith.subf %22, %12 : vector<4x256xf32>
    %24 = math.absf %23 : vector<4x256xf32>
    %25 = vector.broadcast %17 : vector<1x256xf32> to vector<4x256xf32>
    %26 = arith.mulf %24, %25 : vector<4x256xf32>
    %c0_8 = arith.constant 0 : index
    %c0_9 = arith.constant 0 : index
    %27 = vector.load %arg4[%c0_8, %c0_9] : memref<4x256xf32, #tpu.memory_space<vmem>>, vector<4x256xf32>
    tpu.vector_store %arg4[%c0_8, %c0_9], %26 {strides = array<i32>} : memref<4x256xf32, #tpu.memory_space<vmem>>, vector<4x256xf32>,
    %cst_10 = arith.constant 0.000000e+00 : f32
    %28 = vector.broadcast %cst_10 : f32 to vector<4x256xf32>
    %29 = arith.subf %28, %26 : vector<4x256xf32>
    %c0_11 = arith.constant 0 : index
    %c0_12 = arith.constant 0 : index
    %30 = vector.load %arg5[%c0_11, %c0_12] : memref<4x256xf32, #tpu.memory_space<vmem>>, vector<4x256xf32>
    tpu.vector_store %arg5[%c0_11, %c0_12], %29 {strides = array<i32>} : memref<4x256xf32, #tpu.memory_space<vmem>>, vector<4x256xf32>,
    return
  }
  func.func @transform_0(%arg0: i32, %arg1: i32) -> (i32, i32, i32) {
    %c0_i32 = arith.constant 0 : i32
    %c0_i32_0 = arith.constant 0 : i32
    return %arg0, %c0_i32, %arg1 : i32, i32, i32
  }
  func.func @transform_1(%arg0: i32, %arg1: i32) -> (i32, i32, i32) {
    %c0_i32 = arith.constant 0 : i32
    %c0_i32_0 = arith.constant 0 : i32
    return %arg0, %c0_i32, %arg1 : i32, i32, i32
  }
  func.func @transform_2(%arg0: i32, %arg1: i32) -> (i32, i32) {
    %c1_i32 = arith.constant 1 : i32
    %0 = arith.muli %arg0, %c1_i32 : i32
    %1 = arith.addi %0, %arg1 : i32
    %c0_i32 = arith.constant 0 : i32
    %c0_i32_0 = arith.constant 0 : i32
    return %c0_i32, %1 : i32, i32
  }
  func.func @transform_3(%arg0: i32, %arg1: i32) -> (i32, i32) {
    %c1_i32 = arith.constant 1 : i32
    %0 = arith.muli %arg0, %c1_i32 : i32
    %1 = arith.addi %0, %arg1 : i32
    %c0_i32 = arith.constant 0 : i32
    %c0_i32_0 = arith.constant 0 : i32
    return %c0_i32, %1 : i32, i32
  }
}

</mosaic_0001>

<bundles_post_ra>
// kernel: tpu_custom_call.1
= control target key start
LH: loop header
LB: loop body
LE: loop exit
PB: predicated region body
PF: predicated region fallthrough
CT: control target
= control target key end

     0   :  { %9 = vsyncpa [#allocation3], 0  ;;  %s1113_s0 = inlined_call_operand.hbm [shape: f32[2,4,256], index: 0, kind: input, shape index: {}]   ;;  %s1114_s1 = inlined_call_operand.hbm [shape: s32[2,1,256], index: 1, kind: input, shape index: {}]   ;;  %s1115_s2 = inlined_call_operand.hbm [shape: f32[4,512], index: 2, kind: output, shape index: {0}]   ;;  %s1116_s3 = inlined_call_operand.hbm [shape: f32[4,512], index: 3, kind: output, shape index: {1}]  }
   0x1   :  { %11 = vsyncpa [#allocation3 + $0x1], 0 }
   0x2   :  { %12 = vsyncpa [#allocation6], 0 }
   0x3   :  { %14 = vsyncpa [#allocation6 + $0x1], 0 }
   0x4   :  { %15 = vsyncpa [#allocation4], 0 }
   0x5   :  { %17 = vsyncpa [#allocation4 + $0x1], 0 }
   0x6   :  { %18 = vsyncpa [#allocation9], 0 }
   0x7   :  { %20 = vsyncpa [#allocation9 + $0x1], 0  ;;  %s853_s12 = smov 0   ;;  %s855_s13 = smov 0  }
   0x8   :  { %s857_s14 = smov 0   ;;  %s859_s15 = smov 0  }
   0x9   :  { %s861_s16 = smov 0   ;;  %s863_s17 = smov 0  }
   0xa LB: > { %s542_s18 = sadd.s32 4294967295, %s826_s17   ;;  %s543_s19 = sadd.s32 4294967294, %s826_s17   ;;  %s826_s17 = sphi %s863_s17, %s26_s17   ;;  %s822_s16 = sphi %s861_s16, %s1136_s16   ;;  %s818_s15 = sphi %s859_s15, %s1135_s15   ;;  %s814_s14 = sphi %s857_s14, %s1134_s14   ;;  %s810_s13 = sphi %s855_s13, %s1133_s13   ;;  %s806_s12 = sphi %s853_s12, %s1132_s12  }
   0xb   : > { %s38_s20 = sadd.s32 1, %s822_s16  ;;  %s47_s21 = sadd.s32 1, %s814_s14 }
   0xc   : > { %p40_p0 = scmp.ge.s32.totalorder %s38_s20, 2  ;;  %p54_p1 = scmp.ne.s32.totalorder %s814_s14, %s810_s13 }
   0xd   : > { %p55_p2 = scmp.eq.s32.totalorder %s826_s17, 0  ;;  %p60_p3 = scmp.ne.s32.totalorder %s810_s13, %s806_s12 }
   0xe   : > { %s1138_s20 = smov (%p40_p0, %s38_s20), 0  ;;  %p61_p5 = scmp.eq.s32.totalorder %s542_s18, 0 }
   0xf   : > { %p894_p4 = por %p55_p2, %p54_p1  ;;  %s42_s23 = ssub.s32 %s822_s16, %s1138_s20 }
  0x10   : > { %p114_p6 = scmp.eq.s32.totalorder %s542_s18, 1  ;;  %p45_p7 = scmp.eq.s32.totalorder %s42_s23, 0 }
  0x11   : > { %p900_p8 = por %p61_p5, %p60_p3  ;;  %p120_p10 = scmp.eq.s32.totalorder %s543_s19, 1 }
  0x12   : > { %p904_p9 = por %p114_p6, %p54_p1  ;;  %p592_p13 = scmp.lt.s32.totalorder %s826_s17, 2 }
  0x13   : > { %s1120_s24 = scalar_select %p900_p8, 1, 0 }
  0x14   : > { %s1121_s25 = scalar_select %p904_p9, 1, 0 }
  0x15   : > { %s909_s26 = scalar_select %p45_p7, %s814_s14, %s47_s21  }
  0x16   : > { %p911_p11 = por %p120_p10, %p60_p3  ;;  %s918_s28 = sand.u32 1, %s814_s14  }
  0x17   : > { %s546_s29 = sshll.u32 %s918_s28, 3  ;;  %s566_s30 = sshll.u32 %s822_s16, 7 }
  0x18   : > { %s1122_s27 = scalar_select %p911_p11, 1, 0 }
  0x19   : > { %s925_s6 = scalar_lea.hbm %s1113_s0, %s566_s30  ;;  %s172_s7 = scalar_lea.vmem [#allocation2], %s546_s29 }
  0x1a   : > { %s182_s8 = sshll.u32 %s172_s7, 4  ;;  %p931_p0 = pnand %p592_p13, %p894_p4  ;;  %s927_s8 = int_to_ptr.vmem [resolvable:$true] %s182_s8 }
  0x1b   : > { %s169_s10 = scalar_lea.sflag [#allocation3], %s918_s28  ;;  %s648_s11 = scalar_lea.hbm %s925_s6, 128 }
  0x1c   : > { %p649_p3 = scmp.ne.s32.totalorder %s925_s6, %s648_s11  ;;  %p650_p5 = pneg %p931_p0 }
  0x1d   : > { %s653_s21 = scalar_lea.hbm %s1113_s0, 256  ;;  %p654_p4 = scmp.lt.u32.totalorder %s925_s6, %s1113_s0 }
  0x1e   : > { %p651_p6 = pnand %p650_p5, %p649_p3  ;;  %p655_p10 = scmp.lt.u32.totalorder %s653_s21, %s648_s11 }
  0x1f   : > { %p657_p12 = scmp.lt.u32.totalorder %s648_s11, %s925_s6 }
  0x20   : > { %p652_p7 = pneg %p651_p6  ;;  %p656_p13 = por %p655_p10, %p654_p4 }
  0x22   : > { %p658_p1 = por %p657_p12, %p656_p13 }
  0x24   : > { %p659_p2 = pnand %p658_p1, %p652_p7 }
  0x26   : > { %662 = shalt.err (!%p659_p2)
}
  0x27   : > { %s663_s29 = scalar_lea.vmem %s927_s8, 128  ;;  %s828_s30 = smov [#allocation2]  }
  0x28   : > { %p664_p3 = scmp.ne.s32.totalorder %s927_s8, %s663_s29  ;;  %s668_s4 = sshll.u32 %s828_s30, 4  ;;  %s669_s4 = int_to_ptr.vmem [resolvable:$false] %s668_s4 }
  0x29   : > { %s670_s5 = scalar_lea.vmem %s669_s4, 256  ;;  %p671_p9 = scmp.lt.s32.totalorder %s927_s8, %s669_s4 }
  0x2a   : > { %p666_p6 = pnand %p664_p3, %p650_p5  ;;  %p672_p4 = scmp.lt.s32.totalorder %s670_s5, %s663_s29 }
  0x2c   : > { %p667_p11 = pneg %p666_p6  ;;  %p673_p10 = por %p672_p4, %p671_p9 }
  0x2e   : > { %p674_p12 = pnand %p673_p10, %p667_p11 }
  0x30   : > { %677 = shalt.err (!%p674_p12)
}
  0x31   : > { %581 = dma.hbm_to_vmem [thread:$0]  (!%p931_p0), %s925_s6, 128, %s927_s8, %s169_s10  }
  0x32   : > { %p1124_p1 = scmp.lt.s32.totalorder %s826_s17, 3  ;;  %p1125_p2 = scmp.ge.s32.totalorder %s826_s17, 1 }
  0x33   : > { %s549_s11 = sshll.u32 %s918_s28, 1  ;;  %s567_s18 = sshll.u32 %s822_s16, 5 }
  0x34   : > { %p967_p7 = pnand %p1125_p2, %p1124_p1  ;;  %s976_s22 = scalar_lea.hbm %s1114_s1, %s567_s18 }
  0x35   : > { %s193_s23 = scalar_lea.vmem [#allocation5], %s549_s11  ;;  %s190_s6 = scalar_lea.sflag [#allocation6], %s918_s28 }
  0x36   : > { %s1126_s7 = scalar_select %p967_p7, 1, 0 }
  0x37   : > { %s203_s29 = sshll.u32 %s193_s23, 4  ;;  %s678_s8 = scalar_lea.hbm %s976_s22, 32  ;;  %s204_s29 = int_to_ptr.vmem [resolvable:$true] %s203_s29 }
  0x38   : > { %p679_p9 = scmp.ne.s32.totalorder %s976_s22, %s678_s8  ;;  %s683_s4 = scalar_lea.hbm %s1114_s1, 64 }
  0x39   : > { %p684_p3 = scmp.lt.u32.totalorder %s976_s22, %s1114_s1  ;;  %p685_p6 = scmp.lt.u32.totalorder %s683_s4, %s678_s8 }
  0x3a   : > { %p681_p11 = pnand %p679_p9, %p650_p5  ;;  %p687_p10 = scmp.lt.u32.totalorder %s678_s8, %s976_s22 }
  0x3b   : > { %p686_p4 = por %p685_p6, %p684_p3 }
  0x3c   : > { %p682_p13 = pneg %p681_p11 }
  0x3d   : > { %p688_p12 = por %p687_p10, %p686_p4 }
  0x3f   : > { %p689_p1 = pnand %p688_p12, %p682_p13 }
  0x41   : > { %692 = shalt.err (!%p689_p1)
}
  0x42   : > { %s693_s28 = scalar_lea.vmem %s204_s29, 32  ;;  %s829_s11 = smov [#allocation5]  }
  0x43   : > { %p694_p2 = scmp.ne.s32.totalorder %s204_s29, %s693_s28  ;;  %s698_s19 = sshll.u32 %s829_s11, 4  ;;  %s699_s19 = int_to_ptr.vmem [resolvable:$false] %s698_s19 }
  0x44   : > { %s700_s21 = scalar_lea.vmem %s699_s19, 64  ;;  %p701_p8 = scmp.lt.s32.totalorder %s204_s29, %s699_s19 }
  0x45   : > { %p696_p9 = pnand %p694_p2, %p650_p5  ;;  %p702_p7 = scmp.lt.s32.totalorder %s700_s21, %s693_s28 }
  0x47   : > { %p697_p11 = pneg %p696_p9  ;;  %p703_p3 = por %p702_p7, %p701_p8 }
  0x49   : > { %p704_p6 = pnand %p703_p3, %p697_p11 }
  0x4b   : > { %707 = shalt.err (!%p704_p6)
}
  0x4c   : > { %584 = dma.hbm_to_vmem [thread:$0]  (!%p931_p0), %s976_s22, 32, %s204_s29, %s190_s6  }
  0x4d   : > { %p1127_p13 = scmp.ne.s32.totalorder %s1126_s7, 0 }
  0x4e   : > { %s1001_s23 = sand.u32 (!%p1127_p13), 1, %s810_s13   ;;  %p1128_p8 = scmp.ne.s32.totalorder (!%p1127_p13), %s1120_s24, 0 }
  0x4f   : > { %212 = sbr.rel (%p1127_p13) target bundleno = 200 (0xc8), region = 28  ;;  %s1004_s8 = sshll.u32 (!%p1127_p13), %s1001_s23, 3 }
  0x50   : > { %s215_s10 = scalar_lea.sflag (!%p1127_p13), [#allocation3], %s1001_s23  ;;  %s218_s30 = scalar_lea.vmem (!%p1127_p13), [#allocation2], %s1004_s8 }
  0x56   : > { %789 = dma.done.wait (%p1128_p8), %s215_s10, 128  }
  0x57   : > { %791 = vsyncadd (%p1128_p8), %s215_s10, 4294967168  ;;  %s554_s9 = sshll.u32 %s1001_s23, 1  ;;  %s224_s7 = scalar_lea.sflag [#allocation6], %s1001_s23 }
  0x58   : > { %s1014_s22 = scalar_lea.vmem [#allocation5], %s554_s9 }
  0x59   : > { %793 = dma.done.wait (%p1128_p8), %s224_s7, 32  }
  0x5a   : > { %795 = vsyncadd (%p1128_p8), %s224_s7, 4294967264  ;;  %vm271_vm0 = vcmask 1043456   ;;  %v266_v0 = vld [vmem:[%s218_s30] sm:$0xff]  ;;  %v316_v30 = vlaneseq  ;;  %v267_v39 = vld [vmem:[%s1014_s22] sm:$0x3]  ;;  %v830_v44 = vmov 0.0  }
  0x5b   : > { %v269_v1 = vcombine.high %v266_v0, %v266_v0  ;;  %v272_v2 = vsel %vm271_vm0, %v266_v0, -inf  ;;  %vm318_vm1 = vcmp.ge.s32.totalorder %v267_v39, 0  ;;  %s252_s24 = scalar_lea.vmem [#allocation7], %s1004_s8  ;;  %s568_s6 = sshll.u32 %s818_s15, 7 }
  0x5c   : > { %v273_v3 = vrot.slane %v272_v2, 4  ;;  %v317_v35 = vshrl.u32 %v316_v30, 7  ;;  %v557_v45 = vsel %vm318_vm1, 1.0, %v830_v44  ;;  %s386_s29 = sshll.u32 %s252_s24, 4  ;;  %s259_s4 = scalar_lea.vmem [#allocation8], %s1004_s8  ;;  %s1030_s29 = int_to_ptr.vmem [resolvable:$true] %s386_s29 }
  0x5d   : > { %v279_v4 = vsel %vm271_vm0, %v269_v1, -inf  ;;  %s401_s5 = sshll.u32 %s259_s4, 4  ;;  %s1035_s11 = scalar_lea.hbm %s1115_s2, %s568_s6  ;;  %s1037_s5 = int_to_ptr.vmem [resolvable:$true] %s401_s5 }
  0x5e   : > { %v274_v5 = vmax.f32 %v272_v2, %v273_v3  ;;  %v280_v6 = vrot.slane %v279_v4, 4  ;;  %v323_v38 = vsub.s32 0, %v317_v35  ;;  %v327_v40 = vsub.s32 1, %v317_v35  ;;  %s1042_s21 = scalar_lea.hbm %s1116_s3, %s568_s6  ;;  %s366_s10 = scalar_lea.sflag [#allocation4], %s1001_s23 }
  0x5f   : > { %s708_s30 = scalar_lea.vmem %s1030_s29, 128  ;;  %p1129_p5 = scmp.ne.s32.totalorder %s1121_s25, 0 }
  0x60   : > { %v275_v7 = vrot.slane %v274_v5, 2  ;;  %v281_v8 = vmax.f32 %v279_v4, %v280_v6  ;;  %v324_v41 = vrot.slane %v267_v39, %v323_v38  ;;  %v328_v42 = vrot.slane %v267_v39, %v327_v40  ;;  %p709_p0 = scmp.ne.s32.totalorder %s1030_s29, %s708_s30  ;;  %s831_s9 = smov [#allocation7]  }
  0x61   : > { %v344_v51 = vrot.slane %v557_v45, %v323_v38  ;;  %v348_v54 = vrot.slane %v557_v45, %v327_v40  ;;  %s712_s7 = sshll.u32 %s831_s9, 4  ;;  %s713_s7 = int_to_ptr.vmem [resolvable:$false] %s712_s7 }
  0x62   : > { %v276_v9 = vmax.f32 %v274_v5, %v275_v7  ;;  %v282_v10 = vrot.slane %v281_v8, 2  ;;  %vm329_vm2 = vcmp.eq.s32.totalorder %v317_v35, %v324_v41  ;;  %vm330_vm3 = vcmp.eq.s32.totalorder %v317_v35, %v328_v42  ;;  %p710_p7 = pnand %p709_p0, %p1129_p5  ;;  %s714_s22 = scalar_lea.vmem %s713_s7, 256 }
  0x63   : > { %v331_v46 = vsel %vm329_vm2, 1.0, %v830_v44  ;;  %v332_v48 = vsel %vm330_vm3, 1.0, %v830_v44  ;;  %p715_p10 = scmp.lt.s32.totalorder %s1030_s29, %s713_s7  ;;  %p716_p12 = scmp.lt.s32.totalorder %s714_s22, %s708_s30 }
  0x64   : > { %v277_v11 = vrot.slane %v276_v9, 1  ;;  %v283_v12 = vmax.f32 %v281_v8, %v282_v10  ;;  %p711_p4 = pneg %p710_p7 }
  0x65   : > { %p717_p1 = por %p716_p12, %p715_p10 }
  0x66   : > { %v278_v13 = vmax.f32 %v276_v9, %v277_v11  ;;  %v284_v14 = vrot.slane %v283_v12, 1 }
  0x67   : > { %p718_p2 = pnand %p717_p1, %p711_p4 }
  0x68   : > { %v285_v15 = vmax.f32 %v283_v12, %v284_v14 }
  0x6a   : > { %v288_v16 = vcombine.low %v278_v13, %v285_v15 }
  0x6c   : > { %v290_v17 = vsub.f32 %v266_v0, %v288_v16 }
  0x6e   : > { %v291_v18 = vmul.f32 1.442695, %v290_v17 }
  0x70   : > { %644 = vpow2.f32 %v291_v18 }
  0x7a   : > { %v645_v19 = vpop.eup %644 }
  0x7b   : > { %v294_v20 = vcombine.high %v645_v19, %v645_v19  ;;  %v296_v21 = vsel %vm271_vm0, %v645_v19, 0.0 }
  0x7c   : > { %v297_v22 = vrot.slane %v296_v21, 4 }
  0x7d   : > { %v303_v23 = vsel %vm271_vm0, %v294_v20, 0.0 }
  0x7e   : > { %v298_v24 = vadd.f32 %v297_v22, %v296_v21  ;;  %v304_v25 = vrot.slane %v303_v23, 4 }
  0x80   : > { %v299_v26 = vrot.slane %v298_v24, 2  ;;  %v305_v27 = vadd.f32 %v304_v25, %v303_v23 }
  0x82   : > { %v300_v28 = vadd.f32 %v299_v26, %v298_v24  ;;  %v306_v29 = vrot.slane %v305_v27, 2 }
  0x84   : > { %v301_v31 = vrot.slane %v300_v28, 1  ;;  %v307_v32 = vadd.f32 %v306_v29, %v305_v27 }
  0x86   : > { %v302_v33 = vadd.f32 %v301_v31, %v300_v28  ;;  %v308_v34 = vrot.slane %v307_v32, 1 }
  0x88   : > { %v309_v36 = vadd.f32 %v308_v34, %v307_v32 }
  0x8a   : > { %v312_v37 = vcombine.low %v302_v33, %v309_v36 }
  0x8c   : > { %646 = vrcp.f32 %v312_v37 }
  0x96   : > { %v647_v43 = vpop.eup %646 }
  0x97   : > { %v315_v47 = vmul.f32 %v647_v43, %v645_v19 }
  0x99   : > { %v334_v49 = vcombine.high %v315_v47, %v315_v47  ;;  %v336_v50 = vsub.f32 %v331_v46, %v315_v47 }
  0x9b   : > { %v337_v52 = vsub.f32 %v332_v48, %v334_v49  ;;  %v338_v53 = vand.u32 2147483647, %v336_v50 }
  0x9d   : > { %v339_v55 = vand.u32 2147483647, %v337_v52  ;;  %v351_v56 = vmul.f32 %v344_v51, %v338_v53 }
  0x9f   : > { %v352_v57 = vmul.f32 %v348_v54, %v339_v55  ;;  %v358_v58 = vsub.f32 0.0, %v351_v56 }
  0xa1   : > { %v355_v59 = vcombine.low %v351_v56, %v352_v57  ;;  %v359_v60 = vsub.f32 0.0, %v352_v57 }
  0xa3   : > { %357 = vst [vmem:[%s252_s24] sm:$0xff] %v355_v59  ;;  %v362_v61 = vcombine.low %v358_v58, %v359_v60 }
  0xa4   : > { %721 = shalt.err (!%p718_p2)
}
  0xa5   : > { %s722_s24 = scalar_lea.hbm %s1035_s11, 128  ;;  %s726_s28 = scalar_lea.hbm %s1115_s2, 256 }
  0xa6   : > { %p723_p9 = scmp.ne.s32.totalorder %s1035_s11, %s722_s24  ;;  %p727_p6 = scmp.lt.u32.totalorder %s1035_s11, %s1115_s2 }
  0xa7   : > { %p728_p13 = scmp.lt.u32.totalorder %s726_s28, %s722_s24  ;;  %p730_p0 = scmp.lt.u32.totalorder %s722_s24, %s1035_s11 }
  0xa8   : > { %p724_p11 = pnand %p723_p9, %p1129_p5 }
  0xa9   : > { %p729_p8 = por %p728_p13, %p727_p6 }
  0xaa   : > { %p725_p3 = pneg %p724_p11 }
  0xab   : > { %p731_p7 = por %p730_p0, %p729_p8 }
  0xad   : > { %p732_p4 = pnand %p731_p7, %p725_p3 }
  0xaf   : > { %735 = shalt.err (!%p732_p4)
}
  0xb0   : > { %574 = dma.vmem_to_hbm [thread:$0]  (%p1129_p5), %s1030_s29, 128, %s1035_s11, %s366_s10   ;;  %364 = vst [vmem:[%s259_s4] sm:$0xff] %v362_v61 }
  0xb1   : > { %s371_s30 = scalar_lea.sflag [#allocation9], %s1001_s23  ;;  %s736_s9 = scalar_lea.vmem %s1037_s5, 128 }
  0xb2   : > { %p737_p10 = scmp.ne.s32.totalorder %s1037_s5, %s736_s9  ;;  %s832_s7 = smov [#allocation8]  }
  0xb3   : > { %s740_s22 = sshll.u32 %s832_s7, 4  ;;  %s741_s22 = int_to_ptr.vmem [resolvable:$false] %s740_s22 }
  0xb4   : > { %p738_p12 = pnand %p737_p10, %p1129_p5  ;;  %s742_s24 = scalar_lea.vmem %s741_s22, 256 }
  0xb5   : > { %p743_p2 = scmp.lt.s32.totalorder %s1037_s5, %s741_s22  ;;  %p744_p9 = scmp.lt.s32.totalorder %s742_s24, %s736_s9 }
  0xb6   : > { %p739_p1 = pneg %p738_p12 }
  0xb7   : > { %p745_p11 = por %p744_p9, %p743_p2 }
  0xb9   : > { %p746_p3 = pnand %p745_p11, %p739_p1 }
  0xbb   : > { %749 = shalt.err (!%p746_p3)
}
  0xbc   : > { %s750_s23 = scalar_lea.hbm %s1042_s21, 128  ;;  %s754_s4 = scalar_lea.hbm %s1116_s3, 256 }
  0xbd   : > { %p751_p6 = scmp.ne.s32.totalorder %s1042_s21, %s750_s23  ;;  %p755_p0 = scmp.lt.u32.totalorder %s1042_s21, %s1116_s3 }
  0xbe   : > { %p756_p7 = scmp.lt.u32.totalorder %s754_s4, %s750_s23  ;;  %p758_p10 = scmp.lt.u32.totalorder %s750_s23, %s1042_s21 }
  0xbf   : > { %p752_p13 = pnand %p751_p6, %p1129_p5 }
  0xc0   : > { %p757_p4 = por %p756_p7, %p755_p0 }
  0xc1   : > { %p753_p8 = pneg %p752_p13 }
  0xc2   : > { %p759_p12 = por %p758_p10, %p757_p4 }
  0xc4   : > { %p760_p1 = pnand %p759_p12, %p753_p8 }
  0xc6   : > { %763 = shalt.err (!%p760_p1)
}
  0xc7   : > { %575 = dma.vmem_to_hbm [thread:$0]  (%p1129_p5), %s1037_s5, 128, %s1042_s21, %s371_s30  }
  0xc8 PF: > { %s413_s6 = sand.u32 1, %s806_s12   ;;  %p1130_p2 = scmp.ne.s32.totalorder %s1122_s27, 0 }
  0xc9   : > { %p1131_p9 = scmp.ge.s32.totalorder %s826_s17, 2  ;;  %s414_s18 = scalar_lea.sflag [#allocation4], %s413_s6 }
  0xcb   : > { %p586_p11 = pnand %p1131_p9, %p1130_p2 }
  0xcd   : > { %797 = dma.done.wait (!%p586_p11), %s414_s18, 128  }
  0xce   : > { %799 = vsyncadd (!%p586_p11), %s414_s18, 4294967168  ;;  %s423_s28 = scalar_lea.sflag [#allocation9], %s413_s6 }
  0xcf   : > { %801 = dma.done.wait (!%p586_p11), %s423_s28, 128  }
  0xd0   : > { %803 = vsyncadd (!%p586_p11), %s423_s28, 4294967168  ;;  %s26_s17 = sadd.s32 1, %s826_s17   ;;  %s1132_s12 = smov %s810_s13 }
  0xd1   : > { %p23_p3 = scmp.ge.s32.totalorder %s26_s17, 4   ;;  %s1133_s13 = smov %s814_s14 }
  0xd2   : > { %s1134_s14 = smov %s909_s26  ;;  %s1135_s15 = smov %s822_s16 }
  0xd3   : > { %s1136_s16 = smov %s1138_s20  ;;  %25 = sbr.rel (!%p23_p3) target bundleno = 10 (0xa), region = 103 }
  0xda   :  { %428 = vsyncpa [#allocation3], 1 }
  0xdb   :  { %430 = vsyncpa [#allocation3 + $0x1], 1 }
  0xdc   :  { %431 = vsyncpa [#allocation6], 1 }
  0xdd   :  { %433 = vsyncpa [#allocation6 + $0x1], 1 }
  0xde   :  { %434 = vsyncpa [#allocation4], 1 }
  0xdf   :  { %436 = vsyncpa [#allocation4 + $0x1], 1 }
  0xe0   :  { %437 = vsyncpa [#allocation9], 1 }
  0xe1   :  { %439 = vsyncpa [#allocation9 + $0x1], 1 }

</bundles_post_ra>
